<compile_context>
chip_gen: v7x
topology: tpu7x:2x2x1
jax: 0.10.0
libtpu: 0.0.40
codegen_flags: <defaults>
</compile_context>

<pallas_src>
import functools
import math

import jax
import jax.numpy as jnp
from jax.experimental import pallas as pl
from jax.experimental.pallas import tpu as pltpu


def _scaler_kernel(mean_ref, inv_ref, x_ref, o_ref):
    # Hot path: (x - mean) * inv_scale, computed in f32, cast once at the store.
    x = x_ref[...].astype(jnp.float32)
    o_ref[...] = ((x - mean_ref[...]) * inv_ref[...]).astype(o_ref.dtype)


def _round_up(a, b):
    return ((a + b - 1) // b) * b


@functools.partial(jax.jit, static_argnames=("dim",))
def standard_scaler_forward(x, mean, var, count, dim=-1):
    """Pallas implementation of StandardScaler.forward."""
    ndim = x.ndim
    d = dim % ndim

    # Only pay the transpose when the feature axis is not already last.
    # TODO(synk): for non-trailing `dim`, a transpose-free kernel (feature axis
    # mapped to sublanes, stats broadcast as (S,1)) would save two HBM passes.
    needs_move = d != ndim - 1
    xm = jnp.moveaxis(x, d, -1) if needs_move else x
    moved_shape = xm.shape
    S = moved_shape[-1]

    total = xm.size
    R = total // S

    # Per-feature mean / inverse scale, precomputed outside the kernel (O(S)).
    # Matches torch semantics exactly: scale = sqrt(var / (count - 1)).
    n = count.astype(jnp.float32).reshape(()) - 1.0
    mean_f = mean.astype(jnp.float32).reshape(S)
    inv_f = 1.0 / jnp.sqrt(var.astype(jnp.float32).reshape(S) / n)

    # Lane densification: fold k rows into the lane axis so k*S % 128 == 0.
    if S % 128 == 0:
        k = 1
    else:
        base_k = 128 // math.gcd(S, 128)
        k = base_k if (R % base_k == 0) else 1  # fallback: keep (R, S)

    K = k * S
    R2 = R // k
    x2 = xm.reshape(R2, K)
    mean_row = jnp.tile(mean_f, (k,)).reshape(1, K)
    inv_row = jnp.tile(inv_f, (k,)).reshape(1, K)

    # Tile sizing: lane tile up to 1024 (multiple of 128); row tile sized so a
    # single f32 block is <= ~4 MiB. Double-buffered in+out -> <= ~16 MiB VMEM.
    tl = min(1024, _round_up(K, 128))
    block_elems = 1 << 20  # 1M elems = 4 MiB f32 per buffer
    tm_budget = max(8, (block_elems // tl) // 8 * 8)
    tm = min(tm_budget, _round_up(R2, 8))

    grid = (pl.cdiv(R2, tm), pl.cdiv(K, tl))

    out = pl.pallas_call(
        _scaler_kernel,
        out_shape=jax.ShapeDtypeStruct((R2, K), x.dtype),
        grid=grid,
        in_specs=[
            pl.BlockSpec((1, tl), lambda i, j: (0, j)),    # mean row
            pl.BlockSpec((1, tl), lambda i, j: (0, j)),    # inverse-scale row
            pl.BlockSpec((tm, tl), lambda i, j: (i, j)),   # data tile
        ],
        out_specs=pl.BlockSpec((tm, tl), lambda i, j: (i, j)),
        compiler_params=pltpu.CompilerParams(
            dimension_semantics=("parallel", "parallel"),
            vmem_limit_bytes=32 * 1024 * 1024,
        ),
    )(mean_row, inv_row, x2)

    out = out.reshape(moved_shape)
    return jnp.moveaxis(out, -1, d) if needs_move else out


if __name__ == "__main__":
    key = jax.random.PRNGKey(0)
    k_x, k_mean, k_var = jax.random.split(key, 3)

    # Module config: size = 16, dim = -1 (default); input x: [2, 4, 16, 16]
    B, C, H, S = 2, 4, 16, 16
    dim = -1

    x = jax.random.normal(k_x, (B, C, H, S), dtype=jnp.float32)

    # Deterministic "fitted" buffer state (as if update() had been called);
    # __init__ zeros would divide by zero in forward, so use a valid state.
    mean = jax.random.normal(k_mean, (S,), dtype=jnp.float32)
    var = jax.random.uniform(k_var, (S,), dtype=jnp.float32,
                             minval=0.5, maxval=2.0) * 99.0  # sum of sq devs
    count = jnp.array([100], dtype=jnp.int32)  # _count buffer (int64 in torch)

    out = standard_scaler_forward(x, mean, var, count, dim=dim)
    out = jax.block_until_ready(out)

    # Quiet correctness check against a pure-JAX reference.
    scale_ref = jnp.sqrt(var / (count.astype(jnp.float32) - 1.0))
    ref = (x - mean) / scale_ref  # dim=-1 -> broadcasting over last axis
    assert out.shape == x.shape and out.dtype == x.dtype
    assert jnp.allclose(out, ref, atol=1e-5, rtol=1e-5)

    print("KERNEL_OK")
</pallas_src>

<mosaic_0001>
module attributes {stable_mosaic.version = 11 : i64} {
  func.func @_scaler_kernel(%arg0: i32, %arg1: i32, %arg2: memref<1x128xf32, #tpu.memory_space<vmem>>, %arg3: memref<1x128xf32, #tpu.memory_space<vmem>>, %arg4: memref<16x128xf32, #tpu.memory_space<vmem>>, %arg5: memref<16x128xf32, #tpu.memory_space<vmem>>) attributes {dimension_semantics = [#tpu.dimension_semantics<parallel>, #tpu.dimension_semantics<parallel>], iteration_bounds = array<i64: 1, 1>, scalar_prefetch = 0 : i64, scratch_operands = 0 : i64, tpu.core_type = #tpu.core_type<tc>, window_params = [{transform_indices = @transform_0, window_bounds = array<i64: 1, 128>}, {transform_indices = @transform_1, window_bounds = array<i64: 1, 128>}, {transform_indices = @transform_2, window_bounds = array<i64: 16, 128>}, {transform_indices = @transform_3, window_bounds = array<i64: 16, 128>}]} {
    %c0 = arith.constant 0 : index
    %c0_0 = arith.constant 0 : index
    %0 = vector.load %arg4[%c0, %c0_0] : memref<16x128xf32, #tpu.memory_space<vmem>>, vector<16x128xf32>
    %c0_1 = arith.constant 0 : index
    %c0_2 = arith.constant 0 : index
    %1 = vector.load %arg2[%c0_1, %c0_2] : memref<1x128xf32, #tpu.memory_space<vmem>>, vector<1x128xf32>
    %2 = vector.broadcast %1 : vector<1x128xf32> to vector<16x128xf32>
    %3 = arith.subf %0, %2 : vector<16x128xf32>
    %c0_3 = arith.constant 0 : index
    %c0_4 = arith.constant 0 : index
    %4 = vector.load %arg3[%c0_3, %c0_4] : memref<1x128xf32, #tpu.memory_space<vmem>>, vector<1x128xf32>
    %5 = vector.broadcast %4 : vector<1x128xf32> to vector<16x128xf32>
    %6 = arith.mulf %3, %5 : vector<16x128xf32>
    %c0_5 = arith.constant 0 : index
    %c0_6 = arith.constant 0 : index
    %7 = vector.load %arg5[%c0_5, %c0_6] : memref<16x128xf32, #tpu.memory_space<vmem>>, vector<16x128xf32>
    tpu.vector_store %arg5[%c0_5, %c0_6], %6 {strides = array<i32>} : memref<16x128xf32, #tpu.memory_space<vmem>>, vector<16x128xf32>,
    return
  }
  func.func @transform_0(%arg0: i32, %arg1: i32) -> (i32, i32) {
    %c0_i32 = arith.constant 0 : i32
    %c0_i32_0 = arith.constant 0 : i32
    return %c0_i32, %arg1 : i32, i32
  }
  func.func @transform_1(%arg0: i32, %arg1: i32) -> (i32, i32) {
    %c0_i32 = arith.constant 0 : i32
    %c0_i32_0 = arith.constant 0 : i32
    return %c0_i32, %arg1 : i32, i32
  }
  func.func @transform_2(%arg0: i32, %arg1: i32) -> (i32, i32) {
    %c0_i32 = arith.constant 0 : i32
    return %arg0, %arg1 : i32, i32
  }
  func.func @transform_3(%arg0: i32, %arg1: i32) -> (i32, i32) {
    %c0_i32 = arith.constant 0 : i32
    return %arg0, %arg1 : i32, i32
  }
}

</mosaic_0001>

<bundles_post_ra>
// kernel: tile.19
= control target key start
LH: loop header
LB: loop body
LE: loop exit
PB: predicated region body
PF: predicated region fallthrough
CT: control target
= control target key end

     0   :  { %s67_s10 = smov 112   ;;  %s68_s11 = smov 80   ;;  %vm3_vm0 = vcmask 130048   ;;  %vm9_vm1 = vcmask 1048448   ;;  %vm15_vm2 = vcmask 917248   ;;  %vm21_vm3 = vcmask 786048   ;;  %s111_s0 = inlined_call_operand.vmem [shape: f32[8,16], index: 0, kind: input, shape index: {}]   ;;  %s112_s1 = inlined_call_operand.vmem [shape: f32[1,128], index: 1, kind: output, shape index: {}]  }
   0x1   :  { %v53_v0 = vld [vmem:[%s111_s0 + $0x7] sm:$0x1]   ;;  %v55_v1 = vld [vmem:[%s111_s0 + $0x5] sm:$0x1]   ;;  %v54_v2 = vld [vmem:[%s111_s0 + $0x6] sm:$0x1]  }
   0x2   :  { %7 = vrot.lane.b32.xlu0 %v53_v0, %s67_s10  ;;  %19 = vrot.lane.b32.xlu1 %v55_v1, %s68_s11  ;;  %v56_v3 = vld [vmem:[%s111_s0 + $0x4] sm:$0x1]   ;;  %v2_v4 = vld [vmem:[%s111_s0] sm:$0x1]   ;;  %s69_s18 = smov 96   ;;  %s70_s19 = smov 64  }
   0x3   :  { %4 = vst.msk [vmem:[#allocation0] sm:$0x1] %vm3_vm0, %v2_v4   ;;  %v57_v5 = vld [vmem:[%s111_s0 + $0x3] sm:$0x1]   ;;  %v58_v6 = vld [vmem:[%s111_s0 + $0x2] sm:$0x1]  }
   0x4   :  { %s71_s24 = smov 48   ;;  %s72_s25 = smov 32   ;;  %v59_v7 = vld [vmem:[%s111_s0 + $0x1] sm:$0x1]   ;;  %vm27_vm4 = vcmask 654848   ;;  %vm33_vm5 = vcmask 523648  }
   0x5   :  { %s73_s0 = smov 16   ;;  %vm39_vm6 = vcmask 392448   ;;  %vm45_vm7 = vcmask 261248  }
   0x6   :  { %13 = vrot.lane.b32.xlu0 %v54_v2, %s69_s18  ;;  %25 = vrot.lane.b32.xlu1 %v56_v3, %s70_s19 }
   0xa   :  { %31 = vrot.lane.b32.xlu0 %v57_v5, %s71_s24  ;;  %37 = vrot.lane.b32.xlu1 %v58_v6, %s72_s25 }
   0xe   :  { %43 = vrot.lane.b32.xlu0 %v59_v7, %s73_s0 }
  0x74   :  { %v8_v8 = vpop.permute.xlu0 %7   ;;  %v20_v9 = vpop.permute.xlu1 %19  }
  0x75   :  { %10 = vst.msk [vmem:[#allocation0] sm:$0x1] %vm9_vm1, %v8_v8  }
  0x78   :  { %v14_v10 = vpop.permute.xlu0 %13   ;;  %v26_v11 = vpop.permute.xlu1 %25  }
  0x79   :  { %16 = vst.msk [vmem:[#allocation0] sm:$0x1] %vm15_vm2, %v14_v10  }
  0x7a   :  { %22 = vst.msk [vmem:[#allocation0] sm:$0x1] %vm21_vm3, %v20_v9  }
  0x7b   :  { %28 = vst.msk [vmem:[#allocation0] sm:$0x1] %vm27_vm4, %v26_v11  }
  0x7c   :  { %v32_v12 = vpop.permute.xlu0 %31   ;;  %v38_v13 = vpop.permute.xlu1 %37  }
  0x7d   :  { %34 = vst.msk [vmem:[#allocation0] sm:$0x1] %vm33_vm5, %v32_v12  }
  0x7e   :  { %40 = vst.msk [vmem:[#allocation0] sm:$0x1] %vm39_vm6, %v38_v13  }
  0x80   :  { %v44_v14 = vpop.permute.xlu0 %43  }
  0x81   :  { %46 = vst.msk [vmem:[#allocation0] sm:$0x1] %vm45_vm7, %v44_v14  }
  0x88   :  { %v50_v15 = vld [vmem:[#allocation0] sm:$0x1] }
  0x89   :  { %52 = vst [vmem:[%s112_s1] sm:$0x1] %v50_v15 }

// kernel: tile.18
= control target key start
LH: loop header
LB: loop body
LE: loop exit
PB: predicated region body
PF: predicated region fallthrough
CT: control target
= control target key end

     0   :  { %s22_s0 = inlined_call_operand.vmem [shape: f32[16], index: 0, kind: input, shape index: {}]   ;;  %s23_s1 = inlined_call_operand.vmem [shape: f32[8,16], index: 1, kind: output, shape index: {}]  }
   0x1   :  { %v4_v0 = vld [vmem:[%s22_s0] ss:$0 sm:$0xff] }
   0x2   :  { %5 = vst [vmem:[%s23_s1] sm:$0xff] %v4_v0 }

// kernel: standard_scaler_forward.1
= control target key start
LH: loop header
LB: loop body
LE: loop exit
PB: predicated region body
PF: predicated region fallthrough
CT: control target
= control target key end

     0   :  { %s80_s0 = inlined_call_operand.vmem [shape: f32[1,128], index: 0, kind: input, shape index: {}]   ;;  %s81_s1 = inlined_call_operand.vmem [shape: f32[1,128], index: 1, kind: input, shape index: {}]   ;;  %s82_s2 = inlined_call_operand.vmem [shape: f32[16,128], index: 2, kind: input, shape index: {}]   ;;  %s83_s3 = inlined_call_operand.vmem [shape: f32[16,128], index: 3, kind: output, shape index: {}]  }
   0x1   :  { %v14_v0 = vld [vmem:[%s82_s2] sm:$0xff]  ;;  %v15_v4 = vld [vmem:[%s82_s2 + $0x8] sm:$0xff] }
   0x2   :  { %v40_v1 = vld [vmem:[%s80_s0] ss:$0 sm:$0xff] }
   0x3   :  { %v41_v2 = vld [vmem:[%s81_s1] ss:$0 sm:$0xff]  ;;  %v23_v3 = vsub.f32 %v14_v0, %v40_v1  ;;  %v24_v5 = vsub.f32 %v15_v4, %v40_v1 }
   0x5   :  { %v32_v6 = vmul.f32 %v41_v2, %v23_v3  ;;  %v33_v7 = vmul.f32 %v41_v2, %v24_v5 }
   0x7   :  { %34 = vst [vmem:[%s83_s3] sm:$0xff] %v32_v6  ;;  %35 = vst [vmem:[%s83_s3 + $0x8] sm:$0xff] %v33_v7 }

</bundles_post_ra>
